<compile_context>
chip_gen: v6e
topology: v6e:2x2x1
jax: 0.10.0
libtpu: 0.0.40
codegen_flags: <defaults>
</compile_context>

<pallas_src>
import functools
import math

import jax
import jax.numpy as jnp
from jax.experimental import pallas as pl
from jax.experimental.pallas import tpu as pltpu

_LANE_WIDTH = 1024              # slab last dim: wide multiple of 128 -> unmasked vld/vst
_TARGET_BLOCK_BYTES = 4 << 20   # ~4 MiB row-tiles; step overhead (~0.35us) becomes <10% of DMA time
_MIN_GRID_BLOCKS = 8            # keep >=8 blocks when possible so v7x's 2 TCs both get work
_FAST_PATH_ELEMENTS = 65536     # below this, launch/DMA overhead dwarfs the work -> plain XLA


def _sublane_multiple(dtype) -> int:
    """Native sublane granularity (sub-32-bit dtypes pack along sublanes)."""
    itemsize = jnp.dtype(dtype).itemsize
    if itemsize >= 4:
        return 8
    if itemsize == 2:
        return 16
    return 32


def _elementwise_kernel(x_ref, o_ref, *, func, func_kwargs):
    # Whole-tile elementwise apply: VPU / EUP path.
    o_ref[...] = func(x_ref[...], **func_kwargs).astype(o_ref.dtype)


def _kwarg_blocks_pallas(v) -> bool:
    """True if a kwarg value cannot safely be closed over inside the kernel."""
    if isinstance(v, jax.Array):                 # concrete arrays AND tracers under an outer jit
        return True
    tracer_cls = getattr(jax.core, "Tracer", ())
    if tracer_cls and isinstance(v, tracer_cls):
        return True
    if getattr(v, "ndim", 0) > 0:                # numpy arrays etc.
        return True
    return False


class ModuleWrapper:
    """JAX/Pallas equivalent of gatsbi.networks.modules.ModuleWrapper.

    Wraps a jnp function (e.g. jnp.exp) plus keyword args as a callable
    "layer" whose forward pass runs inside a tiled Pallas TPU kernel.

    The Pallas path assumes `func` is strictly elementwise with Python-scalar
    kwargs; anything else (axis semantics, array/tracer kwargs, shape-changing
    or bool-valued funcs) dispatches to plain XLA so semantics always match.
    """

    def __init__(self, func, **kwargs):
        self.func = func
        self.func_args = kwargs
        self._min_pallas_elements = _FAST_PATH_ELEMENTS
        self._compiled_cache = {}

    # ------------------------------------------------------------------ call
    def __call__(self, _input):
        x = jnp.asarray(_input)
        bound = lambda a: self.func(a, **self.func_args)

        # Non-elementwise-safe kwargs -> plain XLA, exact semantics.
        if (
            "axis" in self.func_args
            or "axes" in self.func_args
            or "dim" in self.func_args
            or any(_kwarg_blocks_pallas(v) for v in self.func_args.values())
        ):
            return bound(x)

        # Small-input fast path (and inputs smaller than one lane row).
        if x.size == 0 or x.size < max(self._min_pallas_elements, _LANE_WIDTH):
            return bound(x)

        out_struct = jax.eval_shape(bound, jax.ShapeDtypeStruct(x.shape, x.dtype))
        # Shape-changing funcs or bool outputs (fragile 1-bit stores) -> XLA.
        if (
            out_struct.shape != x.shape
            or jnp.dtype(out_struct.dtype) == jnp.dtype(jnp.bool_)
        ):
            return bound(x)

        key = (tuple(x.shape), str(jnp.dtype(x.dtype)), str(jnp.dtype(out_struct.dtype)))
        fn = self._compiled_cache.get(key)
        if fn is None:
            fn = self._build_pallas_fn(
                tuple(x.shape), jnp.dtype(x.dtype), jnp.dtype(out_struct.dtype)
            )
            self._compiled_cache[key] = fn
        return fn(x)

    # ------------------------------------------------------------ build/jit
    def _build_pallas_fn(self, shape, in_dtype, out_dtype):
        func, func_kwargs = self.func, dict(self.func_args)

        n = math.prod(shape)
        n_main = (n // _LANE_WIDTH) * _LANE_WIDTH   # lane-aligned prefix -> Pallas
        tail = n - n_main                           # < 1024 elements -> plain XLA
        rows = n_main // _LANE_WIDTH

        in_item = jnp.dtype(in_dtype).itemsize
        out_item = jnp.dtype(out_dtype).itemsize
        itemsize = max(in_item, out_item)
        sublane = max(_sublane_multiple(in_dtype), _sublane_multiple(out_dtype))

        # ~4 MiB row-tiles, but keep >= _MIN_GRID_BLOCKS blocks when the input
        # allows it (v7x megacore sharding + pipeline overlap), and keep the
        # block (8,128)-aligned unless it covers the full slab.
        target_rows = max(1, _TARGET_BLOCK_BYTES // (_LANE_WIDTH * itemsize))
        cap_rows = pl.cdiv(rows, _MIN_GRID_BLOCKS)
        block_rows = min(target_rows, cap_rows)
        block_rows = ((block_rows + sublane - 1) // sublane) * sublane
        if block_rows >= rows:
            block_rows = rows                       # single full-extent block
        grid = (pl.cdiv(rows, block_rows),)

        # Explicit scoped-VMEM budget: 2 double-buffers x (in + out block),
        # plus headroom.  Covers v5e's smaller 16 MiB default; stays well
        # under v7x's 64 MiB physical VMEM.
        in_block_bytes = block_rows * _LANE_WIDTH * in_item
        out_block_bytes = block_rows * _LANE_WIDTH * out_item
        vmem_limit = max(2 * (in_block_bytes + out_block_bytes) + (16 << 20), 32 << 20)
        vmem_limit = min(vmem_limit, 48 << 20)

        kernel = functools.partial(
            _elementwise_kernel, func=func, func_kwargs=func_kwargs
        )
        cost = pl.CostEstimate(
            flops=n_main,
            transcendentals=n_main,  # conservative hint (exp/tanh-like funcs)
            bytes_accessed=n_main * (in_item + out_item),
        )

        pallas_fn = pl.pallas_call(
            kernel,
            out_shape=jax.ShapeDtypeStruct((rows, _LANE_WIDTH), out_dtype),
            grid=grid,
            in_specs=[pl.BlockSpec((block_rows, _LANE_WIDTH), lambda i: (i, 0))],
            out_specs=pl.BlockSpec((block_rows, _LANE_WIDTH), lambda i: (i, 0)),
            compiler_params=pltpu.CompilerParams(
                dimension_semantics=("parallel",),   # v7x shards row-blocks over 2 TCs
                vmem_limit_bytes=int(vmem_limit),
            ),
            cost_estimate=cost,
        )

        def run(x):
            flat = x.reshape(-1)
            main = (flat if tail == 0 else flat[:n_main]).reshape(rows, _LANE_WIDTH)
            out_flat = pallas_fn(main).reshape(-1)
            if tail:
                out_tail = func(flat[n_main:], **func_kwargs).astype(out_dtype)
                out_flat = jnp.concatenate([out_flat, out_tail])
            return out_flat.reshape(shape)

        return jax.jit(run)


if __name__ == "__main__":
    key = jax.random.PRNGKey(0)
    k1, k2, k3, k4 = jax.random.split(key, 4)

    # Canonical small NCHW input (2, 4, 16, 16) — force the Pallas path so the
    # kernel itself is exercised (single full-extent block).
    x = jax.random.normal(k1, (2, 4, 16, 16), dtype=jnp.float32)
    exp_layer = ModuleWrapper(jnp.exp)
    exp_layer._min_pallas_elements = 0
    y = jax.block_until_ready(exp_layer(x))
    assert y.shape == x.shape and y.dtype == x.dtype
    assert jnp.allclose(y, jnp.exp(x), rtol=1e-5, atol=1e-5)

    # kwargs case: ModuleWrapper(torch.clamp, min=0.0) analogue.
    clip_layer = ModuleWrapper(jnp.clip, min=0.0)
    clip_layer._min_pallas_elements = 0
    z = jax.block_until_ready(clip_layer(x))
    assert jnp.allclose(z, jnp.clip(x, min=0.0), rtol=1e-6, atol=1e-6)

    # Larger input: multi-block "parallel" grid (>= 8 blocks), no padding.
    x_big = jax.random.normal(k2, (2, 8, 128, 160), dtype=jnp.float32)
    tanh_layer = ModuleWrapper(jnp.tanh)
    yb = jax.block_until_ready(tanh_layer(x_big))
    assert yb.shape == x_big.shape
    assert jnp.allclose(yb, jnp.tanh(x_big), rtol=1e-5, atol=1e-5)

    # bf16 input exercises the dtype-aware sublane alignment (kept bf16 end-to-end).
    x_bf16 = jax.random.normal(k3, (2, 4, 32, 32), dtype=jnp.bfloat16)
    exp_bf16 = ModuleWrapper(jnp.exp)
    exp_bf16._min_pallas_elements = 0
    yb16 = jax.block_until_ready(exp_bf16(x_bf16))
    assert yb16.dtype == jnp.bfloat16 and yb16.shape == x_bf16.shape
    assert jnp.allclose(
        yb16.astype(jnp.float32),
        jnp.exp(x_bf16).astype(jnp.float32),
        rtol=2e-2,
        atol=2e-2,
    )

    # Non-1024-multiple size: aligned prefix via Pallas, tiny tail via XLA (no pad/crop pass).
    x_tail = jax.random.normal(k4, (2, 3, 16, 17), dtype=jnp.float32)  # 1632 elements
    exp_tail = ModuleWrapper(jnp.exp)
    exp_tail._min_pallas_elements = 0
    yt = jax.block_until_ready(exp_tail(x_tail))
    assert yt.shape == x_tail.shape
    assert jnp.allclose(yt, jnp.exp(x_tail), rtol=1e-5, atol=1e-5)

    # Cached-compile path: second call with same shape/dtype reuses the jitted fn.
    y2 = jax.block_until_ready(exp_layer(x))
    assert jnp.allclose(y2, y)

    # Small-input fast path (bypasses pallas_call, plain XLA fusion).
    relu_layer = ModuleWrapper(jax.nn.relu)
    w = jax.block_until_ready(relu_layer(x))
    assert jnp.allclose(w, jax.nn.relu(x))

    print("KERNEL_OK")
</pallas_src>

<mosaic_0001>
module attributes {stable_mosaic.version = 11 : i64} {
  func.func @_elementwise_kernel(%arg0: i32, %arg1: memref<2x1024xf32, #tpu.memory_space<vmem>>, %arg2: memref<2x1024xf32, #tpu.memory_space<vmem>>) attributes {dimension_semantics = [#tpu.dimension_semantics<parallel>], iteration_bounds = array<i64: 1>, scalar_prefetch = 0 : i64, scratch_operands = 0 : i64, tpu.core_type = #tpu.core_type<tc>, window_params = [{transform_indices = @transform_0, window_bounds = array<i64: 2, 1024>}, {transform_indices = @transform_1, window_bounds = array<i64: 2, 1024>}]} {
    %c0 = arith.constant 0 : index
    %c0_0 = arith.constant 0 : index
    %0 = vector.load %arg1[%c0, %c0_0] : memref<2x1024xf32, #tpu.memory_space<vmem>>, vector<2x1024xf32>
    %1 = math.exp %0 : vector<2x1024xf32>
    %c0_1 = arith.constant 0 : index
    %c0_2 = arith.constant 0 : index
    %2 = vector.load %arg2[%c0_1, %c0_2] : memref<2x1024xf32, #tpu.memory_space<vmem>>, vector<2x1024xf32>
    tpu.vector_store %arg2[%c0_1, %c0_2], %1 {strides = array<i32>} : memref<2x1024xf32, #tpu.memory_space<vmem>>, vector<2x1024xf32>,
    return
  }
  func.func @transform_0(%arg0: i32) -> (i32, i32) {
    %c0_i32 = arith.constant 0 : i32
    %c0_i32_0 = arith.constant 0 : i32
    return %arg0, %c0_i32 : i32, i32
  }
  func.func @transform_1(%arg0: i32) -> (i32, i32) {
    %c0_i32 = arith.constant 0 : i32
    %c0_i32_0 = arith.constant 0 : i32
    return %arg0, %c0_i32 : i32, i32
  }
}

</mosaic_0001>

<bundles_post_ra>
// kernel: run.1
= control target key start
LH: loop header
LB: loop body
LE: loop exit
PB: predicated region body
PF: predicated region fallthrough
CT: control target
= control target key end

     0   :  { %s46_s0 = inlined_call_operand.vmem [shape: f32[2,1024], index: 0, kind: input, shape index: {}]   ;;  %s47_s1 = inlined_call_operand.vmem [shape: f32[2,1024], index: 1, kind: output, shape index: {}]  }
   0x1   :  { %v8_v0 = vld [vmem:[%s46_s0] sm:$0xff]  ;;  %v9_v1 = vld [vmem:[%s46_s0 + $0x8] sm:$0xff] }
   0x2   :  { %v10_v2 = vmul.f32 1.442695, %v8_v0  ;;  %v12_v3 = vmul.f32 1.442695, %v9_v1 }
   0x4   :  { %20 = vpow2.f32 %v10_v2 }
   0x5   :  { %22 = vpow2.f32 %v12_v3 }
  0x11   :  { %v21_v4 = vpop.eup %20 }
  0x12   :  { %v23_v5 = vpop.eup %22  ;;  %14 = vst [vmem:[%s47_s1] sm:$0xff] %v21_v4 }
  0x13   :  { %15 = vst [vmem:[%s47_s1 + $0x8] sm:$0xff] %v23_v5 }

</bundles_post_ra>
